<compile_context>
chip_gen: v5e
topology: v5e:2x2
jax: 0.10.0
libtpu: 0.0.40
codegen_flags: <defaults>
</compile_context>

<pallas_src>
import jax
import jax.numpy as jnp
from jax.experimental import pallas as pl
from jax.experimental.pallas import tpu as pltpu  # noqa: F401  (TPU backend)


def _identity_kernel(ids_ref, mask_ref, ids_out_ref, mask_out_ref):
    # Pure pass-through: outputs alias inputs, so this lowers to in-place
    # VMEM copies of two tiny full-array tiles with no extra HBM allocation.
    ids_out_ref[...] = ids_ref[...]
    mask_out_ref[...] = mask_ref[...]


@jax.jit
def _pallas_smoke_test(input_ids, attention_mask):
    """Test-only plumbing: identity through a minimal Pallas TPU kernel.

    Not part of `my_bert_forward` (which does nothing, per the reference).
    No wrapper-side reshape/pad/stack copies; two inputs, two aliased outputs.
    """
    B, S = input_ids.shape
    ids_i32 = input_ids.astype(jnp.int32)
    mask_i32 = attention_mask.astype(jnp.int32)

    full_spec = pl.BlockSpec((B, S), lambda: (0, 0))  # full-array block
    ids_out, mask_out = pl.pallas_call(
        _identity_kernel,
        grid=(),
        in_specs=[full_spec, full_spec],
        out_specs=[full_spec, full_spec],
        out_shape=[
            jax.ShapeDtypeStruct((B, S), jnp.int32),
            jax.ShapeDtypeStruct((B, S), jnp.int32),
        ],
        # Outputs alias inputs: no extra HBM output buffers for the identity.
        input_output_aliases={0: 0, 1: 1},
    )(ids_i32, mask_i32)

    return (ids_out.astype(input_ids.dtype),
            mask_out.astype(attention_mask.dtype))


def my_bert_forward(input_ids, attention_mask):
    """Exactly matches MyBERT.forward semantics: body is `pass`, returns None.

    No pallas_call is issued here — the reference forward does no compute, so
    the hot path costs nothing.
    """
    del input_ids, attention_mask
    return None


if __name__ == "__main__":
    key = jax.random.PRNGKey(0)
    B, S = 2, 8
    k1, _ = jax.random.split(key)
    input_ids = jax.random.randint(k1, (B, S), minval=0, maxval=30522,
                                   dtype=jnp.int32)
    attention_mask = jnp.ones((B, S), dtype=jnp.int32)

    # Forward semantics: returns None (reference body is `pass`).
    result = my_bert_forward(input_ids, attention_mask)
    assert result is None

    # Exercise the Pallas TPU path once via the test-only identity kernel.
    ids_out, mask_out = _pallas_smoke_test(input_ids, attention_mask)
    jax.block_until_ready((ids_out, mask_out))

    assert bool(jnp.all(ids_out == input_ids))
    assert bool(jnp.all(mask_out == attention_mask))
    print("KERNEL_OK")
</pallas_src>

<mosaic_0001>
module attributes {stable_mosaic.version = 11 : i64} {
  func.func @_identity_kernel(%arg0: memref<2x8xi32, #tpu.memory_space<vmem>>, %arg1: memref<2x8xi32, #tpu.memory_space<vmem>>, %arg2: memref<2x8xi32, #tpu.memory_space<vmem>>, %arg3: memref<2x8xi32, #tpu.memory_space<vmem>>) attributes {dimension_semantics = [], scalar_prefetch = 0 : i64, scratch_operands = 0 : i64, tpu.core_type = #tpu.core_type<tc>} {
    %c0 = arith.constant 0 : index
    %c0_0 = arith.constant 0 : index
    %0 = vector.load %arg0[%c0, %c0_0] : memref<2x8xi32, #tpu.memory_space<vmem>>, vector<2x8xi32>
    %c0_1 = arith.constant 0 : index
    %c0_2 = arith.constant 0 : index
    %1 = vector.load %arg2[%c0_1, %c0_2] : memref<2x8xi32, #tpu.memory_space<vmem>>, vector<2x8xi32>
    tpu.vector_store %arg2[%c0_1, %c0_2], %0 {strides = array<i32>} : memref<2x8xi32, #tpu.memory_space<vmem>>, vector<2x8xi32>,
    %c0_3 = arith.constant 0 : index
    %c0_4 = arith.constant 0 : index
    %2 = vector.load %arg1[%c0_3, %c0_4] : memref<2x8xi32, #tpu.memory_space<vmem>>, vector<2x8xi32>
    %c0_5 = arith.constant 0 : index
    %c0_6 = arith.constant 0 : index
    %3 = vector.load %arg3[%c0_5, %c0_6] : memref<2x8xi32, #tpu.memory_space<vmem>>, vector<2x8xi32>
    tpu.vector_store %arg3[%c0_5, %c0_6], %2 {strides = array<i32>} : memref<2x8xi32, #tpu.memory_space<vmem>>, vector<2x8xi32>,
    return
  }
}

</mosaic_0001>

<bundles_post_ra>
// kernel: _pallas_smoke_test.1
= control target key start
LH: loop header
LB: loop body
LE: loop exit
PB: predicated region body
PF: predicated region fallthrough
CT: control target
= control target key end

     0   :  { %9 = vsyncpa [#allocation3], 0  ;;  %s226_s0 = inlined_call_operand.hbm [shape: s32[2,8], index: 0, kind: input, shape index: {}, may-alias: {0,2}]   ;;  %s227_s1 = inlined_call_operand.hbm [shape: s32[2,8], index: 1, kind: input, shape index: {}, may-alias: {1,3}]   ;;  %s228_s2 = inlined_call_operand.hbm [shape: s32[2,8], index: 2, kind: output, shape index: {0}, may-alias: {0,2}]   ;;  %s229_s3 = inlined_call_operand.hbm [shape: s32[2,8], index: 3, kind: output, shape index: {1}, may-alias: {1,3}]  }
   0x1   :  { %10 = vsyncpa [#allocation6], 0 }
   0x2   :  { %11 = vsyncpa [#allocation4], 0 }
   0x3   :  { %12 = vsyncpa [#allocation9], 0  ;;  %s18_s14 = sshll.u32 %s226_s0, 4  ;;  %s190_s15 = smov [#allocation2]   ;;  %s19_s14 = int_to_ptr.hbm [resolvable:$true] %s18_s14 }
   0x4   :  { %s20_s16 = sshll.u32 %s190_s15, 4  ;;  %s29_s19 = sshll.u32 %s227_s1, 4  ;;  %s21_s16 = int_to_ptr.vmem [resolvable:$true] %s20_s16  ;;  %s30_s19 = int_to_ptr.hbm [resolvable:$true] %s29_s19 }
   0x5   :  { %23 = dma.hbm_to_vmem [thread:$0]  %s19_s14, 32, %s21_s16, [#allocation3]  }
   0x6   :  { %s191_s20 = smov [#allocation5]  }
   0x7   :  { %s31_s21 = sshll.u32 %s191_s20, 4  ;;  %s32_s21 = int_to_ptr.vmem [resolvable:$true] %s31_s21 }
   0x8   :  { %34 = dma.hbm_to_vmem [thread:$0]  %s30_s19, 32, %s32_s21, [#allocation6]  }
   0x9   :  { %182 = dma.done.wait [#allocation3], 32  }
   0xa   :  { %183 = vsyncadd [#allocation3], 4294967264 }
   0xb   :  { %184 = dma.done.wait [#allocation6], 32  }
   0xc   :  { %185 = vsyncadd [#allocation6], 4294967264  ;;  %s192_s22 = smov [#allocation7]   ;;  %s55_s25 = sshll.u32 %s228_s2, 4  ;;  %vm44_vm0 = vcmask 58368   ;;  %s56_s25 = int_to_ptr.hbm [resolvable:$true] %s55_s25 }
   0xd   :  { %s53_s0 = sshll.u32 %s192_s22, 4  ;;  %s193_s26 = smov [#allocation8]   ;;  %v43_v0 = vld [vmem:[#allocation2] sm:$0x3]  ;;  %v46_v1 = vld [vmem:[#allocation5] sm:$0x3]  ;;  %s54_s0 = int_to_ptr.vmem [resolvable:$true] %s53_s0 }
   0xe   :  { %s64_s27 = sshll.u32 %s193_s26, 4  ;;  %s66_s29 = sshll.u32 %s229_s3, 4  ;;  %45 = vst.msk [vmem:[#allocation7] sm:$0x3] %vm44_vm0, %v43_v0  ;;  %s65_s27 = int_to_ptr.vmem [resolvable:$true] %s64_s27  ;;  %s67_s29 = int_to_ptr.hbm [resolvable:$true] %s66_s29 }
   0xf   :  { %47 = vst.msk [vmem:[#allocation8] sm:$0x3] %vm44_vm0, %v46_v1  ;;  %58 = dma.vmem_to_hbm [thread:$0]  %s54_s0, 32, %s56_s25, [#allocation4]  }
  0x10   :  { %69 = dma.vmem_to_hbm [thread:$0]  %s65_s27, 32, %s67_s29, [#allocation9]  }
  0x11   :  { %186 = dma.done.wait [#allocation4], 32  }
  0x12   :  { %187 = vsyncadd [#allocation4], 4294967264 }
  0x13   :  { %188 = dma.done.wait [#allocation9], 32  }
  0x14   :  { %189 = vsyncadd [#allocation9], 4294967264 }
  0x15   :  { %78 = vsyncpa [#allocation3], 1 }
  0x16   :  { %79 = vsyncpa [#allocation6], 1 }
  0x17   :  { %80 = vsyncpa [#allocation4], 1 }
  0x18   :  { %81 = vsyncpa [#allocation9], 1 }

</bundles_post_ra>
